<compile_context>
chip_gen: v7x
topology: tpu7x:2x2x1
jax: 0.10.0
libtpu: 0.0.40
codegen_flags: <defaults>
</compile_context>

<pallas_src>
import jax
import jax.numpy as jnp
from jax.experimental import pallas as pl
from jax.experimental.pallas import tpu as pltpu


def _round_up(a, m):
    return ((a + m - 1) // m) * m


def _sublane(dtype):
    """Native sublane multiple for the dtype (f32:8, bf16:16, int8/fp8:32)."""
    itemsize = jnp.dtype(dtype).itemsize
    return {4: 8, 2: 16, 1: 32}.get(itemsize, 8)


def _mlp_head_kernel(x_ref, w0_ref, b0_ref, w1_ref, b1_ref, w2_ref, b2_ref,
                     out_ref):
    """Fused 3-layer MLP: (Linear+ReLU) x2 then Linear, f32 accumulation."""
    x = x_ref[...]  # native dtype straight into the MXU

    # Layer 0: Linear + ReLU
    h = jnp.dot(x, w0_ref[...], preferred_element_type=jnp.float32)
    h = jnp.maximum(h + b0_ref[...], 0.0)        # (1, d1) broadcasts over rows

    # Layer 1: Linear + ReLU
    h = jnp.dot(h.astype(w1_ref.dtype), w1_ref[...],
                preferred_element_type=jnp.float32)
    h = jnp.maximum(h + b1_ref[...], 0.0)

    # Final layer: Linear (no activation)
    h = jnp.dot(h.astype(w2_ref.dtype), w2_ref[...],
                preferred_element_type=jnp.float32)
    h = h + b2_ref[...]

    out_ref[...] = h.astype(out_ref.dtype)


def mlp_mixer_graph_head(x, y, params, *, tile_n=1024):
    """Pallas implementation of MLPMixerGraphHead.forward.

    Args:
      x: (N, dim_in) graph embeddings (batch.x).
      y: (N, ...) graph labels (batch.y), passed through unchanged.
      params: dict with w0,b0,w1,b1,w2,b2; weights are (in, out) (i.e. the
        transpose of torch.nn.Linear's (out, in)), biases are (1, out).
      tile_n: max rows per grid step.
    Returns:
      (pred, true) just like the torch module: pred is (N, dim_out), true is y.
    """
    n, dim_in = x.shape
    w0, b0 = params["w0"], params["b0"]
    w1, b1 = params["w1"], params["b1"]
    w2, b2 = params["w2"], params["b2"]
    d1, d2, dim_out = w0.shape[1], w1.shape[1], w2.shape[1]

    # ---- row tiling: dtype-aware sublane rounding, ragged last block -------
    sub = _sublane(x.dtype)
    tn = min(tile_n, _round_up(n, sub))
    tn = max(_round_up(tn, sub), sub)
    grid = (pl.cdiv(n, tn),)

    # Weights / biases: full-extent resident blocks (block index never moves).
    full = lambda shape: pl.BlockSpec(shape, lambda i: (0, 0))

    itemsize = jnp.dtype(x.dtype).itemsize
    param_bytes = sum(int(p.size) * jnp.dtype(p.dtype).itemsize
                      for p in (w0, b0, w1, b1, w2, b2))
    cost = pl.CostEstimate(
        flops=int(2 * n * (dim_in * d1 + d1 * d2 + d2 * dim_out)),
        transcendentals=0,
        bytes_accessed=int(n * (dim_in + dim_out) * itemsize + param_bytes),
    )

    pred = pl.pallas_call(
        _mlp_head_kernel,
        out_shape=jax.ShapeDtypeStruct((n, dim_out), x.dtype),
        grid_spec=pl.GridSpec(
            grid=grid,
            in_specs=[
                pl.BlockSpec((tn, dim_in), lambda i: (i, 0)),  # x row tile
                full((dim_in, d1)),                            # w0 (resident)
                full((1, d1)),                                 # b0
                full((d1, d2)),                                # w1
                full((1, d2)),                                 # b1
                full((d2, dim_out)),                           # w2
                full((1, dim_out)),                            # b2
            ],
            out_specs=pl.BlockSpec((tn, dim_out), lambda i: (i, 0)),
        ),
        compiler_params=pltpu.CompilerParams(
            dimension_semantics=("parallel",)),
        cost_estimate=cost,
    )(x, w0, b0, w1, b1, w2, b2)

    true = y
    return pred, true


def init_params(key, dim_in, dim_out, L=2, dtype=jnp.float32):
    """Parameter init matching the torch module's layer shapes.

    Weights are stored pre-transposed as (in, out) once, here, so the forward
    pass does no per-call padding/transposing.
    """
    dims = [dim_in // (2 ** l) for l in range(L + 1)] + [dim_out]
    params = {}
    keys = jax.random.split(key, L + 1)
    for l in range(L + 1):
        fan_in, fan_out = dims[l], dims[l + 1]
        scale = 1.0 / jnp.sqrt(jnp.float32(fan_in))
        w = jax.random.uniform(keys[l], (fan_in, fan_out), dtype,
                               minval=-scale, maxval=scale)
        b = jax.random.uniform(jax.random.fold_in(keys[l], 1), (1, fan_out),
                               dtype, minval=-scale, maxval=scale)
        params[f"w{l}"] = w
        params[f"b{l}"] = b
    return params


def _reference(x, y, params):
    h = jnp.maximum(x @ params["w0"] + params["b0"], 0.0)
    h = jnp.maximum(h @ params["w1"] + params["b1"], 0.0)
    return h @ params["w2"] + params["b2"], y


if __name__ == "__main__":
    key = jax.random.PRNGKey(0)
    k_x, k_y, k_p = jax.random.split(key, 3)

    N = 16        # number of graphs in the batch
    DIM_IN = 64   # graph embedding dim
    DIM_OUT = 3   # prediction dim
    L = 2

    x = jax.random.normal(k_x, (N, DIM_IN), jnp.float32)    # batch.x
    y = jax.random.randint(k_y, (N,), 0, DIM_OUT)            # batch.y
    params = init_params(k_p, DIM_IN, DIM_OUT, L=L)

    pred, true = mlp_mixer_graph_head(x, y, params)
    pred = jax.block_until_ready(pred)
    true = jax.block_until_ready(true)

    ref_pred, ref_true = _reference(x, y, params)
    assert pred.shape == (N, DIM_OUT)
    assert jnp.allclose(pred, ref_pred, atol=1e-4, rtol=1e-4)
    assert jnp.array_equal(true, ref_true)

    # non-multiple-of-8 batch, multi-step grid, ragged last block
    N2 = 1037
    x2 = jax.random.normal(jax.random.fold_in(k_x, 7), (N2, DIM_IN), jnp.float32)
    y2 = jax.random.randint(jax.random.fold_in(k_y, 7), (N2,), 0, DIM_OUT)
    pred2, true2 = mlp_mixer_graph_head(x2, y2, params)
    pred2 = jax.block_until_ready(pred2)
    ref_pred2, _ = _reference(x2, y2, params)
    assert pred2.shape == (N2, DIM_OUT)
    assert jnp.allclose(pred2, ref_pred2, atol=1e-4, rtol=1e-4)
    assert jnp.array_equal(true2, y2)

    # bf16 path: exercises the dtype-aware (16-row) sublane rounding
    N3 = 37
    x3 = jax.random.normal(jax.random.fold_in(k_x, 9), (N3, DIM_IN),
                           jnp.float32).astype(jnp.bfloat16)
    y3 = jax.random.randint(jax.random.fold_in(k_y, 9), (N3,), 0, DIM_OUT)
    params_bf16 = {k: v.astype(jnp.bfloat16) for k, v in params.items()}
    pred3, true3 = mlp_mixer_graph_head(x3, y3, params_bf16)
    pred3 = jax.block_until_ready(pred3)
    ref_pred3, _ = _reference(x3.astype(jnp.float32), y3,
                              {k: v.astype(jnp.float32)
                               for k, v in params_bf16.items()})
    assert pred3.shape == (N3, DIM_OUT)
    assert pred3.dtype == jnp.bfloat16
    assert bool(jnp.all(jnp.isfinite(pred3.astype(jnp.float32))))
    assert jnp.allclose(pred3.astype(jnp.float32), ref_pred3,
                        atol=1e-1, rtol=1e-1)
    assert jnp.array_equal(true3, y3)

    print("KERNEL_OK")
</pallas_src>

<mosaic_0001>
module attributes {stable_mosaic.version = 11 : i64} {
  func.func @_mlp_head_kernel(%arg0: i32, %arg1: memref<16x64xf32, #tpu.memory_space<vmem>>, %arg2: memref<64x32xf32, #tpu.memory_space<vmem>>, %arg3: memref<1x32xf32, #tpu.memory_space<vmem>>, %arg4: memref<32x16xf32, #tpu.memory_space<vmem>>, %arg5: memref<1x16xf32, #tpu.memory_space<vmem>>, %arg6: memref<16x3xf32, #tpu.memory_space<vmem>>, %arg7: memref<1x3xf32, #tpu.memory_space<vmem>>, %arg8: memref<16x3xf32, #tpu.memory_space<vmem>>) attributes {dimension_semantics = [#tpu.dimension_semantics<parallel>], iteration_bounds = array<i64: 1>, scalar_prefetch = 0 : i64, scratch_operands = 0 : i64, tpu.core_type = #tpu.core_type<tc>, window_params = [{transform_indices = @transform_0, window_bounds = array<i64: 16, 64>}, {pipeline_mode = #tpu.pipeline_mode<synchronous>, transform_indices = @transform_1, window_bounds = array<i64: 64, 32>}, {pipeline_mode = #tpu.pipeline_mode<synchronous>, transform_indices = @transform_2, window_bounds = array<i64: 1, 32>}, {pipeline_mode = #tpu.pipeline_mode<synchronous>, transform_indices = @transform_3, window_bounds = array<i64: 32, 16>}, {pipeline_mode = #tpu.pipeline_mode<synchronous>, transform_indices = @transform_4, window_bounds = array<i64: 1, 16>}, {pipeline_mode = #tpu.pipeline_mode<synchronous>, transform_indices = @transform_5, window_bounds = array<i64: 16, 3>}, {pipeline_mode = #tpu.pipeline_mode<synchronous>, transform_indices = @transform_6, window_bounds = array<i64: 1, 3>}, {transform_indices = @transform_7, window_bounds = array<i64: 16, 3>}]} {
    %c0 = arith.constant 0 : index
    %c0_0 = arith.constant 0 : index
    %0 = vector.load %arg1[%c0, %c0_0] : memref<16x64xf32, #tpu.memory_space<vmem>>, vector<16x64xf32>
    %c0_1 = arith.constant 0 : index
    %c0_2 = arith.constant 0 : index
    %1 = vector.load %arg2[%c0_1, %c0_2] : memref<64x32xf32, #tpu.memory_space<vmem>>, vector<64x32xf32>
    %cst = arith.constant dense<0.000000e+00> : vector<16x32xf32>
    %2 = tpu.matmul %0, %1, %cst {dimension_numbers = #tpu.dot_dimension_numbers<[1], [0], [0], [1], [0, 0, 1, 1], [], []>} : vector<16x64xf32>, vector<64x32xf32>, vector<16x32xf32> -> vector<16x32xf32>
    %c0_3 = arith.constant 0 : index
    %c0_4 = arith.constant 0 : index
    %3 = vector.load %arg3[%c0_3, %c0_4] : memref<1x32xf32, #tpu.memory_space<vmem>>, vector<1x32xf32>
    %4 = vector.broadcast %3 : vector<1x32xf32> to vector<16x32xf32>
    %5 = arith.addf %2, %4 : vector<16x32xf32>
    %cst_5 = arith.constant 0.000000e+00 : f32
    %6 = vector.broadcast %cst_5 : f32 to vector<16x32xf32>
    %7 = arith.maximumf %5, %6 : vector<16x32xf32>
    %c0_6 = arith.constant 0 : index
    %c0_7 = arith.constant 0 : index
    %8 = vector.load %arg4[%c0_6, %c0_7] : memref<32x16xf32, #tpu.memory_space<vmem>>, vector<32x16xf32>
    %cst_8 = arith.constant dense<0.000000e+00> : vector<16x16xf32>
    %9 = tpu.matmul %7, %8, %cst_8 {dimension_numbers = #tpu.dot_dimension_numbers<[1], [0], [0], [1], [0, 0, 1, 1], [], []>} : vector<16x32xf32>, vector<32x16xf32>, vector<16x16xf32> -> vector<16x16xf32>
    %c0_9 = arith.constant 0 : index
    %c0_10 = arith.constant 0 : index
    %10 = vector.load %arg5[%c0_9, %c0_10] : memref<1x16xf32, #tpu.memory_space<vmem>>, vector<1x16xf32>
    %11 = vector.broadcast %10 : vector<1x16xf32> to vector<16x16xf32>
    %12 = arith.addf %9, %11 : vector<16x16xf32>
    %cst_11 = arith.constant 0.000000e+00 : f32
    %13 = vector.broadcast %cst_11 : f32 to vector<16x16xf32>
    %14 = arith.maximumf %12, %13 : vector<16x16xf32>
    %c0_12 = arith.constant 0 : index
    %c0_13 = arith.constant 0 : index
    %15 = vector.load %arg6[%c0_12, %c0_13] : memref<16x3xf32, #tpu.memory_space<vmem>>, vector<16x3xf32>
    %cst_14 = arith.constant dense<0.000000e+00> : vector<16x3xf32>
    %16 = tpu.matmul %14, %15, %cst_14 {dimension_numbers = #tpu.dot_dimension_numbers<[1], [0], [0], [1], [0, 0, 1, 1], [], []>} : vector<16x16xf32>, vector<16x3xf32>, vector<16x3xf32> -> vector<16x3xf32>
    %c0_15 = arith.constant 0 : index
    %c0_16 = arith.constant 0 : index
    %17 = vector.load %arg7[%c0_15, %c0_16] : memref<1x3xf32, #tpu.memory_space<vmem>>, vector<1x3xf32>
    %18 = vector.broadcast %17 : vector<1x3xf32> to vector<16x3xf32>
    %19 = arith.addf %16, %18 : vector<16x3xf32>
    %c0_17 = arith.constant 0 : index
    %c0_18 = arith.constant 0 : index
    %20 = vector.load %arg8[%c0_17, %c0_18] : memref<16x3xf32, #tpu.memory_space<vmem>>, vector<16x3xf32>
    tpu.vector_store %arg8[%c0_17, %c0_18], %19 {strides = array<i32>} : memref<16x3xf32, #tpu.memory_space<vmem>>, vector<16x3xf32>,
    return
  }
  func.func @transform_0(%arg0: i32) -> (i32, i32) {
    %c0_i32 = arith.constant 0 : i32
    %c0_i32_0 = arith.constant 0 : i32
    return %arg0, %c0_i32 : i32, i32
  }
  func.func @transform_1(%arg0: i32) -> (i32, i32) {
    %c0_i32 = arith.constant 0 : i32
    %c0_i32_0 = arith.constant 0 : i32
    %c0_i32_1 = arith.constant 0 : i32
    return %c0_i32, %c0_i32_0 : i32, i32
  }
  func.func @transform_2(%arg0: i32) -> (i32, i32) {
    %c0_i32 = arith.constant 0 : i32
    %c0_i32_0 = arith.constant 0 : i32
    %c0_i32_1 = arith.constant 0 : i32
    return %c0_i32, %c0_i32_0 : i32, i32
  }
  func.func @transform_3(%arg0: i32) -> (i32, i32) {
    %c0_i32 = arith.constant 0 : i32
    %c0_i32_0 = arith.constant 0 : i32
    %c0_i32_1 = arith.constant 0 : i32
    return %c0_i32, %c0_i32_0 : i32, i32
  }
  func.func @transform_4(%arg0: i32) -> (i32, i32) {
    %c0_i32 = arith.constant 0 : i32
    %c0_i32_0 = arith.constant 0 : i32
    %c0_i32_1 = arith.constant 0 : i32
    return %c0_i32, %c0_i32_0 : i32, i32
  }
  func.func @transform_5(%arg0: i32) -> (i32, i32) {
    %c0_i32 = arith.constant 0 : i32
    %c0_i32_0 = arith.constant 0 : i32
    %c0_i32_1 = arith.constant 0 : i32
    return %c0_i32, %c0_i32_0 : i32, i32
  }
  func.func @transform_6(%arg0: i32) -> (i32, i32) {
    %c0_i32 = arith.constant 0 : i32
    %c0_i32_0 = arith.constant 0 : i32
    %c0_i32_1 = arith.constant 0 : i32
    return %c0_i32, %c0_i32_0 : i32, i32
  }
  func.func @transform_7(%arg0: i32) -> (i32, i32) {
    %c0_i32 = arith.constant 0 : i32
    %c0_i32_0 = arith.constant 0 : i32
    return %arg0, %c0_i32 : i32, i32
  }
}

</mosaic_0001>

<bundles_post_ra>
// kernel: tpu_custom_call.1
= control target key start
LH: loop header
LB: loop body
LE: loop exit
PB: predicated region body
PF: predicated region fallthrough
CT: control target
= control target key end

     0   :  { %vm43_vm0 = vcmask 523264   ;;  %vm138_vm1 = vcmask 261120   ;;  %vm231_vm2 = vcmask 130048   ;;  %vm313_vm3 = vcmask 23552   ;;  %s519_s1 = inlined_call_operand.vmem [shape: f32[64,32], index: 1, kind: input, shape index: {}]   ;;  %s520_s0 = inlined_call_operand.vmem [shape: f32[16,64], index: 0, kind: input, shape index: {}]   ;;  %s521_s3 = inlined_call_operand.vmem [shape: f32[32,16], index: 3, kind: input, shape index: {}]   ;;  %s522_s2 = inlined_call_operand.vmem [shape: f32[1,32], index: 2, kind: input, shape index: {}]   ;;  %s523_s5 = inlined_call_operand.vmem [shape: f32[16,3], index: 5, kind: input, shape index: {}]   ;;  %s524_s4 = inlined_call_operand.vmem [shape: f32[1,16], index: 4, kind: input, shape index: {}]   ;;  %s525_s6 = inlined_call_operand.vmem [shape: f32[1,3], index: 6, kind: input, shape index: {}]   ;;  %s526_s7 = inlined_call_operand.vmem [shape: f32[16,3], index: 7, kind: output, shape index: {}]  }
   0x1   :  { %v28_v0 = vld [vmem:[%s519_s1] sm:$0xff]  ;;  %v29_v1 = vld [vmem:[%s519_s1 + $0x8] sm:$0xff]  ;;  %v30_v2 = vld [vmem:[%s519_s1 + $0x10] sm:$0xff] }
   0x2   :  { %v386_v3 = vpack.c.bf16 %v29_v1, %v28_v0  ;;  %v31_v4 = vld [vmem:[%s519_s1 + $0x18] sm:$0xff]  ;;  %v32_v6 = vld [vmem:[%s519_s1 + $0x20] sm:$0xff]  ;;  %v33_v7 = vld [vmem:[%s519_s1 + $0x28] sm:$0xff] }
   0x3   :  { %v390_v5 = vpack.c.bf16 %v31_v4, %v30_v2  ;;  %v26_v8 = vld [vmem:[%s520_s0] sm:$0xff]  ;;  %v128_v10 = vld [vmem:[%s521_s3 + $0x8] sm:$0xff]  ;;  %v394_v12 = vpack.c.bf16 %v33_v7, %v32_v6  ;;  %v34_v13 = vld [vmem:[%s519_s1 + $0x30] sm:$0xff] }
   0x4   :  { %387 = vmatprep.subr.bf16.mxu0 %v386_v3  ;;  %365 = vmatprep.mubr.msk.f32.mxu0 %vm43_vm0, %v26_v8  ;;  %v127_v9 = vld [vmem:[%s521_s3] sm:$0xff]  ;;  %v35_v14 = vld [vmem:[%s519_s1 + $0x38] sm:$0xff]  ;;  %v27_v16 = vld [vmem:[%s520_s0 + $0x8] sm:$0xff] }
   0x5   :  { %389 = vmatpush3.bf16.msra.mxu0 %v386_v3  ;;  %v402_v11 = vpack.c.bf16 %v128_v10, %v127_v9  ;;  %v398_v15 = vpack.c.bf16 %v35_v14, %v34_v13  ;;  %v129_v17 = vld [vmem:[%s521_s3 + $0x10] sm:$0xff]  ;;  %v130_v18 = vld [vmem:[%s521_s3 + $0x18] sm:$0xff]  ;;  %v320_v20 = vld [vmem:[%s522_s2] ss:$0 sm:$0xff] }
   0x6   :  { %391 = vmatprep.subr.bf16.mxu0 %v390_v5  ;;  %v406_v19 = vpack.c.bf16 %v130_v18, %v129_v17  ;;  %v222_v27 = vld [vmem:[%s523_s5] sm:$0xff]  ;;  %v223_v28 = vld [vmem:[%s523_s5 + $0x8] sm:$0xff] }
   0x7   :  { %403 = vmatprep.subr.bf16.mxu1 %v402_v11  ;;  %v410_v29 = vpack.c.bf16 %v223_v28, %v222_v27  ;;  %v323_v30 = vld [vmem:[%s524_s4] ss:$0 sm:$0xff] }
   0x8   :  { %405 = vmatpush3.bf16.msra.mxu1 %v402_v11  ;;  %v326_v37 = vld [vmem:[%s525_s6] ss:$0 sm:$0xff] }
   0x9   :  { %393 = vmatpush3.bf16.msra.mxu0 %v390_v5  ;;  %407 = vmatprep.subr.bf16.mxu1 %v406_v19 }
   0xa   :  { %395 = vmatprep.subr.bf16.mxu0 %v394_v12 }
   0xc   :  { %409 = vmatpush3.bf16.msra.mxu1 %v406_v19 }
   0xd   :  { %397 = vmatpush3.bf16.msra.mxu0 %v394_v12  ;;  %411 = vmatprep.subr.bf16.mxu1 %v410_v29 }
   0xe   :  { %399 = vmatprep.subr.bf16.mxu0 %v398_v15 }
  0x11   :  { %401 = vmatpush3.bf16.msra.mxu0 %v398_v15 }
  0x14   :  { %366 = vmatmul.mubr.msk.f32.vlgmr.msra.gmra.mrb[0].mxu0 %vm43_vm0, %v27_v16 }
  0xe7   :  { %v367_v21 = vpop.f32.mrb[0].mxu0 }
  0xe8   :  { %v122_v22 = vadd.f32 %v367_v21, %v320_v20  ;;  %v116_v23 = vpop.f32.mrb[1].mxu0 }
  0xe9   :  { %v117_v24 = vadd.f32 %v320_v20, %v116_v23 }
  0xea   :  { %v126_v26 = vmax.f32 %v122_v22, 0.0 }
  0xeb   :  { %v125_v25 = vmax.f32 %v117_v24, 0.0 }
  0xed   :  { %376 = vmatprep.mubr.msk.f32.mxu1 %vm138_vm1, %v125_v25 }
  0xee   :  { %377 = vmatmul.mubr.msk.f32.vlgmr.msra.gmra.mrb[0].mxu1 %vm138_vm1, %v126_v26 }
  0xef   :  { %413 = vmatpush3.bf16.msra.mxu1 %v410_v29 }
 0x1c1   :  { %v378_v31 = vpop.f32.mrb[0].mxu1 }
 0x1c2   :  { %v217_v32 = vadd.f32 %v378_v31, %v323_v30  ;;  %v211_v33 = vpop.f32.mrb[1].mxu1 }
 0x1c3   :  { %v212_v34 = vadd.f32 %v323_v30, %v211_v33 }
 0x1c4   :  { %v221_v36 = vmax.f32 %v217_v32, 0.0 }
 0x1c5   :  { %v220_v35 = vmax.f32 %v212_v34, 0.0 }
 0x1c7   :  { %383 = vmatprep.mubr.msk.f32.mxu1 %vm231_vm2, %v220_v35 }
 0x1c8   :  { %384 = vmatmul.mubr.msk.f32.vlgmr.msra.gmra.mrb[2].mxu1 %vm231_vm2, %v221_v36 }
 0x29b   :  { %v385_v38 = vpop.f32.mrb[2].mxu1 }
 0x29c   :  { %v310_v39 = vadd.f32 %v385_v38, %v326_v37  ;;  %v304_v40 = vpop.f32.mrb[3].mxu1 }
 0x29d   :  { %v305_v41 = vadd.f32 %v326_v37, %v304_v40 }
 0x29e   :  { %315 = vst.msk [vmem:[%s526_s7 + $0x8] sm:$0xff] %vm313_vm3, %v310_v39 }
 0x29f   :  { %314 = vst.msk [vmem:[%s526_s7] sm:$0xff] %vm313_vm3, %v305_v41 }

</bundles_post_ra>
